<compile_context>
chip_gen: v6e
topology: v6e:2x2x1
jax: 0.10.0
libtpu: 0.0.40
codegen_flags: <defaults>
</compile_context>

<pallas_src>
import functools

import jax
import jax.numpy as jnp
from jax import lax
from jax.experimental import pallas as pl
from jax.experimental.pallas import tpu as pltpu


def _round_up(x, m):
    return (x + m - 1) // m * m


def _critic_kernel(state_ref, eps_ref,
                   ew1_ref, wsq_ref, whead_ref, dw1_ref, dw4t_ref, bias_ref,
                   out_ref, *, hidden_dim, z_dim):
    H, Z = hidden_dim, z_dim
    f32 = jnp.float32

    def bias(row, width):
        # [1, width] static slice of the bias slab; broadcasts over the batch tile.
        return bias_ref[row:row + 1, :width]

    x = state_ref[...]

    # ----- encoder: 3 x (Linear + ReLU) -----
    h = jnp.maximum(
        jnp.dot(x, ew1_ref[...], preferred_element_type=f32) + bias(0, H), 0.0)
    h = jnp.maximum(
        jnp.dot(h, wsq_ref[0], preferred_element_type=f32) + bias(1, H), 0.0)
    h = jnp.maximum(
        jnp.dot(h, wsq_ref[1], preferred_element_type=f32) + bias(2, H), 0.0)

    # ----- latent heads: two lane-aligned matmuls (no sub-vreg lane split) -----
    mean = jnp.dot(h, whead_ref[0], preferred_element_type=f32) + bias(3, Z)
    log_var = jnp.dot(h, whead_ref[1], preferred_element_type=f32) + bias(4, Z)

    # ----- reparameterize: z = mean + eps * exp(0.5 * log_var) -----
    z = mean + eps_ref[...] * jnp.exp(0.5 * log_var)

    # ----- decoder: 3 x (Linear + ReLU) -----
    d = jnp.maximum(
        jnp.dot(z, dw1_ref[...], preferred_element_type=f32) + bias(5, H), 0.0)
    d = jnp.maximum(
        jnp.dot(d, wsq_ref[2], preferred_element_type=f32) + bias(6, H), 0.0)
    d = jnp.maximum(
        jnp.dot(d, wsq_ref[3], preferred_element_type=f32) + bias(7, H), 0.0)

    # ----- final Linear(H -> 1), computed transposed so the output is lane-dense -----
    #   v8[8, tm] = dw4t[8, H] (row 0 = dw4.T, rest zero) contracted with d[tm, H]
    v8 = lax.dot_general(dw4t_ref[...], d, (((1,), (1,)), ((), ())),
                         preferred_element_type=f32)
    v = v8[0:1, :] + bias(8, 1)                      # [1, tm]

    # exact sigmoid via tanh (EUP), strictly within [0, 1]
    out_ref[0] = 0.5 * (jnp.tanh(0.5 * v) + 1.0)


def critic_forward(state, eps, packed, *, hidden_dim, z_dim, tm=1024):
    """state: [B, state_dim] f32; eps: [B, z_dim] f32 (N(0,1) noise).

    packed: (ew1, wsq, whead, dw1, dw4t, bias_slab) from pack_params.
    Returns [B, 1] f32.
    """
    B, state_dim = state.shape
    H, Z = hidden_dim, z_dim
    ew1, wsq, whead, dw1, dw4t, bias_slab = packed
    assert eps.shape == (B, Z)

    # ---- batch-tile selection: multiple of 8, >=2 grid steps whenever B >= 16 ----
    tm = min(_round_up(tm, 8), max(8, _round_up((B + 1) // 2, 8)))

    # ---- VMEM budget: weights single-buffered + double-buffered streamed tiles ----
    bw = bias_slab.shape[1]
    weight_bytes = 4 * (state_dim * H + 4 * H * H + 2 * H * Z + Z * H + 8 * H + 9 * bw)

    def stream_bytes(t):
        io = 2 * 4 * (t * state_dim + t * Z + t)     # double-buffered state/eps/out tiles
        live = 6 * 4 * t * max(H, Z)                 # live f32 intermediates headroom
        return io + live

    target = 44 * (1 << 20)                          # headroom on v7x (64 MiB/TC)
    while tm > 8 and weight_bytes + stream_bytes(tm) > target:
        tm = max(8, _round_up(tm // 2, 8))
    vmem_limit = int(min(56 * (1 << 20),
                         max(32 * (1 << 20),
                             1.5 * (weight_bytes + stream_bytes(tm)) + (1 << 20))))

    B_pad = _round_up(B, tm)
    if B_pad != B:
        state = jnp.pad(state, ((0, B_pad - B), (0, 0)))
        eps = jnp.pad(eps, ((0, B_pad - B), (0, 0)))
    n_tiles = B_pad // tm
    grid = (n_tiles,)

    const2 = lambda i: (0, 0)
    const3 = lambda i: (0, 0, 0)

    # advisory cost estimate so XLA schedules sensibly around the custom call
    macs_per_row = (state_dim * H + 4 * H * H + 2 * H * Z + Z * H + 8 * H)
    cost = pl.CostEstimate(
        flops=2 * B_pad * macs_per_row,
        transcendentals=B_pad * (Z + 1),
        bytes_accessed=B_pad * (state_dim + Z + 1) * 4 + weight_bytes,
    )

    def run(single_buffer_weights):
        w_mode = pl.Buffered(1) if single_buffer_weights else None
        in_specs = [
            pl.BlockSpec((tm, state_dim), lambda i: (i, 0)),   # streamed per tile
            pl.BlockSpec((tm, Z), lambda i: (i, 0)),           # streamed per tile
            pl.BlockSpec(ew1.shape, const2, pipeline_mode=w_mode),      # resident weights
            pl.BlockSpec(wsq.shape, const3, pipeline_mode=w_mode),
            pl.BlockSpec(whead.shape, const3, pipeline_mode=w_mode),
            pl.BlockSpec(dw1.shape, const2, pipeline_mode=w_mode),
            pl.BlockSpec(dw4t.shape, const2, pipeline_mode=w_mode),
            pl.BlockSpec(bias_slab.shape, const2, pipeline_mode=w_mode),
        ]
        out = pl.pallas_call(
            functools.partial(_critic_kernel, hidden_dim=H, z_dim=Z),
            out_shape=jax.ShapeDtypeStruct((n_tiles, 1, tm), jnp.float32),
            grid=grid,
            in_specs=in_specs,
            out_specs=pl.BlockSpec((1, 1, tm), lambda i: (i, 0, 0)),
            compiler_params=pltpu.CompilerParams(
                dimension_semantics=("parallel",),
                vmem_limit_bytes=vmem_limit),
            cost_estimate=cost,
        )(state, eps, ew1, wsq, whead, dw1, dw4t, bias_slab)
        return jax.block_until_ready(out)

    try:
        out = run(True)           # single-buffered resident weights
    except Exception:
        out = run(False)          # fallback: default (double-buffered) weight specs

    # (n_tiles, 1, tm) lane-dense rows -> [B, 1] in batch order
    return out.reshape(-1, 1)[:B]


def init_params(key, state_dim, hidden_dim, z_dim):
    """PyTorch-style Linear params, pre-transposed: each layer -> (W:[in,out], b:[1,out])."""
    dims = [
        (state_dim, hidden_dim),   # encoder.0
        (hidden_dim, hidden_dim),  # encoder.2
        (hidden_dim, hidden_dim),  # encoder.4
        (hidden_dim, z_dim),       # fc_mean
        (hidden_dim, z_dim),       # fc_log_var
        (z_dim, hidden_dim),       # decoder.0
        (hidden_dim, hidden_dim),  # decoder.2
        (hidden_dim, hidden_dim),  # decoder.4
        (hidden_dim, 1),           # decoder.6
    ]
    layers = []
    for i, (din, dout) in enumerate(dims):
        kw, kb = jax.random.split(jax.random.fold_in(key, i))
        bound = 1.0 / float(din) ** 0.5      # PyTorch default uniform init bound
        w = jax.random.uniform(kw, (din, dout), jnp.float32, -bound, bound)
        b = jax.random.uniform(kb, (1, dout), jnp.float32, -bound, bound)
        layers.append((w, b))
    return layers


def pack_params(layers, hidden_dim, z_dim):
    """Pack per-layer (W, b) into the 6 kernel operands."""
    (ew1, eb1), (ew2, eb2), (ew3, eb3), (mw, mb), (lw, lb), \
        (dw1, db1), (dw2, db2), (dw3, db3), (dw4, db4) = layers

    H, Z = hidden_dim, z_dim
    BW = max(H, Z)

    wsq = jnp.stack([ew2, ew3, dw2, dw3])            # [4, H, H] square hidden weights
    whead = jnp.stack([mw, lw])                      # [2, H, Z] mean / log_var heads
    dw4t = jnp.pad(dw4.T, ((0, 7), (0, 0)))          # [8, H], row 0 = dw4.T, rest zero

    def row(b):
        return jnp.pad(b, ((0, 0), (0, BW - b.shape[1])))

    bias_slab = jnp.concatenate(
        [row(eb1), row(eb2), row(eb3), row(mb), row(lb),
         row(db1), row(db2), row(db3), row(db4)], axis=0)    # [9, BW]

    return ew1, wsq, whead, dw1, dw4t, bias_slab


def critic_ref(state, eps, layers):
    """Pure-JAX reference of the PyTorch forward (f32)."""
    hi = jax.lax.Precision.HIGHEST
    (ew1, eb1), (ew2, eb2), (ew3, eb3), (mw, mb), (lw, lb), \
        (dw1, db1), (dw2, db2), (dw3, db3), (dw4, db4) = layers
    relu = jax.nn.relu
    h = relu(jnp.dot(state, ew1, precision=hi) + eb1)
    h = relu(jnp.dot(h, ew2, precision=hi) + eb2)
    h = relu(jnp.dot(h, ew3, precision=hi) + eb3)
    mean = jnp.dot(h, mw, precision=hi) + mb
    log_var = jnp.dot(h, lw, precision=hi) + lb
    z = mean + eps * jnp.exp(0.5 * log_var)
    d = relu(jnp.dot(z, dw1, precision=hi) + db1)
    d = relu(jnp.dot(d, dw2, precision=hi) + db2)
    d = relu(jnp.dot(d, dw3, precision=hi) + db3)
    v = jnp.dot(d, dw4, precision=hi) + db4
    return jax.nn.sigmoid(v)


if __name__ == "__main__":
    # Small, module-consistent shapes.
    B, STATE_DIM, HIDDEN_DIM, Z_DIM = 8, 6, 32, 16

    key = jax.random.PRNGKey(0)
    k_state, k_eps, k_params = jax.random.split(key, 3)

    state = jax.random.normal(k_state, (B, STATE_DIM), dtype=jnp.float32)
    # eps ~ N(0,1) for the reparameterization trick (generated outside the kernel).
    eps = jax.random.normal(k_eps, (B, Z_DIM), dtype=jnp.float32)

    layers = init_params(k_params, STATE_DIM, HIDDEN_DIM, Z_DIM)
    packed = pack_params(layers, HIDDEN_DIM, Z_DIM)

    out = critic_forward(state, eps, packed, hidden_dim=HIDDEN_DIM, z_dim=Z_DIM)
    out = jax.block_until_ready(out)
    ref = critic_ref(state, eps, layers)

    assert out.shape == (B, 1)
    assert bool(jnp.all(jnp.isfinite(out)))
    assert bool(jnp.all((out >= 0.0) & (out <= 1.0)))   # exact sigmoid stays in [0, 1]
    assert bool(jnp.allclose(out, ref, atol=1e-2, rtol=1e-2)), \
        float(jnp.max(jnp.abs(out - ref)))
    print("KERNEL_OK")
</pallas_src>

<mosaic_0001>
module attributes {stable_mosaic.version = 11 : i64} {
  func.func @_critic_kernel(%arg0: i32, %arg1: memref<8x6xf32, #tpu.memory_space<vmem>>, %arg2: memref<8x16xf32, #tpu.memory_space<vmem>>, %arg3: memref<6x32xf32, #tpu.memory_space<vmem>>, %arg4: memref<4x32x32xf32, #tpu.memory_space<vmem>>, %arg5: memref<2x32x16xf32, #tpu.memory_space<vmem>>, %arg6: memref<16x32xf32, #tpu.memory_space<vmem>>, %arg7: memref<8x32xf32, #tpu.memory_space<vmem>>, %arg8: memref<9x32xf32, #tpu.memory_space<vmem>>, %arg9: memref<1x1x8xf32, #tpu.memory_space<vmem>>) attributes {dimension_semantics = [#tpu.dimension_semantics<parallel>], iteration_bounds = array<i64: 1>, scalar_prefetch = 0 : i64, scratch_operands = 0 : i64, tpu.core_type = #tpu.core_type<tc>, window_params = [{transform_indices = @transform_0, window_bounds = array<i64: 8, 6>}, {transform_indices = @transform_1, window_bounds = array<i64: 8, 16>}, {pipeline_mode = #tpu.pipeline_mode<synchronous>, transform_indices = @transform_2, window_bounds = array<i64: 6, 32>}, {pipeline_mode = #tpu.pipeline_mode<synchronous>, transform_indices = @transform_3, window_bounds = array<i64: 4, 32, 32>}, {pipeline_mode = #tpu.pipeline_mode<synchronous>, transform_indices = @transform_4, window_bounds = array<i64: 2, 32, 16>}, {pipeline_mode = #tpu.pipeline_mode<synchronous>, transform_indices = @transform_5, window_bounds = array<i64: 16, 32>}, {pipeline_mode = #tpu.pipeline_mode<synchronous>, transform_indices = @transform_6, window_bounds = array<i64: 8, 32>}, {pipeline_mode = #tpu.pipeline_mode<synchronous>, transform_indices = @transform_7, window_bounds = array<i64: 9, 32>}, {transform_indices = @transform_8, window_bounds = array<i64: 1, 1, 8>}]} {
    %c0 = arith.constant 0 : index
    %c0_0 = arith.constant 0 : index
    %0 = vector.load %arg1[%c0, %c0_0] : memref<8x6xf32, #tpu.memory_space<vmem>>, vector<8x6xf32>
    %c0_1 = arith.constant 0 : index
    %c0_2 = arith.constant 0 : index
    %1 = vector.load %arg3[%c0_1, %c0_2] : memref<6x32xf32, #tpu.memory_space<vmem>>, vector<6x32xf32>
    %cst = arith.constant dense<0.000000e+00> : vector<8x32xf32>
    %2 = tpu.matmul %0, %1, %cst {dimension_numbers = #tpu.dot_dimension_numbers<[1], [0], [0], [1], [0, 0, 1, 1], [], []>} : vector<8x6xf32>, vector<6x32xf32>, vector<8x32xf32> -> vector<8x32xf32>
    %c0_3 = arith.constant 0 : index
    %c0_4 = arith.constant 0 : index
    %3 = vector.load %arg8[%c0_3, %c0_4] : memref<9x32xf32, #tpu.memory_space<vmem>>, vector<1x32xf32>
    %4 = vector.broadcast %3 : vector<1x32xf32> to vector<8x32xf32>
    %5 = arith.addf %2, %4 : vector<8x32xf32>
    %cst_5 = arith.constant 0.000000e+00 : f32
    %6 = vector.broadcast %cst_5 : f32 to vector<8x32xf32>
    %7 = arith.maximumf %5, %6 : vector<8x32xf32>
    %c0_6 = arith.constant 0 : index
    %c0_7 = arith.constant 0 : index
    %c0_8 = arith.constant 0 : index
    %8 = vector.load %arg4[%c0_6, %c0_7, %c0_8] : memref<4x32x32xf32, #tpu.memory_space<vmem>>, vector<1x32x32xf32>
    %9 = vector.shape_cast %8 : vector<1x32x32xf32> to vector<32x32xf32>
    %cst_9 = arith.constant dense<0.000000e+00> : vector<8x32xf32>
    %10 = tpu.matmul %7, %9, %cst_9 {dimension_numbers = #tpu.dot_dimension_numbers<[1], [0], [0], [1], [0, 0, 1, 1], [], []>} : vector<8x32xf32>, vector<32x32xf32>, vector<8x32xf32> -> vector<8x32xf32>
    %c1 = arith.constant 1 : index
    %c0_10 = arith.constant 0 : index
    %11 = vector.load %arg8[%c1, %c0_10] : memref<9x32xf32, #tpu.memory_space<vmem>>, vector<1x32xf32>
    %12 = vector.broadcast %11 : vector<1x32xf32> to vector<8x32xf32>
    %13 = arith.addf %10, %12 : vector<8x32xf32>
    %cst_11 = arith.constant 0.000000e+00 : f32
    %14 = vector.broadcast %cst_11 : f32 to vector<8x32xf32>
    %15 = arith.maximumf %13, %14 : vector<8x32xf32>
    %c1_12 = arith.constant 1 : index
    %c0_13 = arith.constant 0 : index
    %c0_14 = arith.constant 0 : index
    %16 = vector.load %arg4[%c1_12, %c0_13, %c0_14] : memref<4x32x32xf32, #tpu.memory_space<vmem>>, vector<1x32x32xf32>
    %17 = vector.shape_cast %16 : vector<1x32x32xf32> to vector<32x32xf32>
    %cst_15 = arith.constant dense<0.000000e+00> : vector<8x32xf32>
    %18 = tpu.matmul %15, %17, %cst_15 {dimension_numbers = #tpu.dot_dimension_numbers<[1], [0], [0], [1], [0, 0, 1, 1], [], []>} : vector<8x32xf32>, vector<32x32xf32>, vector<8x32xf32> -> vector<8x32xf32>
    %c2 = arith.constant 2 : index
    %c0_16 = arith.constant 0 : index
    %19 = vector.load %arg8[%c2, %c0_16] : memref<9x32xf32, #tpu.memory_space<vmem>>, vector<1x32xf32>
    %20 = vector.broadcast %19 : vector<1x32xf32> to vector<8x32xf32>
    %21 = arith.addf %18, %20 : vector<8x32xf32>
    %cst_17 = arith.constant 0.000000e+00 : f32
    %22 = vector.broadcast %cst_17 : f32 to vector<8x32xf32>
    %23 = arith.maximumf %21, %22 : vector<8x32xf32>
    %c0_18 = arith.constant 0 : index
    %c0_19 = arith.constant 0 : index
    %c0_20 = arith.constant 0 : index
    %24 = vector.load %arg5[%c0_18, %c0_19, %c0_20] : memref<2x32x16xf32, #tpu.memory_space<vmem>>, vector<1x32x16xf32>
    %25 = vector.shape_cast %24 : vector<1x32x16xf32> to vector<32x16xf32>
    %cst_21 = arith.constant dense<0.000000e+00> : vector<8x16xf32>
    %26 = tpu.matmul %23, %25, %cst_21 {dimension_numbers = #tpu.dot_dimension_numbers<[1], [0], [0], [1], [0, 0, 1, 1], [], []>} : vector<8x32xf32>, vector<32x16xf32>, vector<8x16xf32> -> vector<8x16xf32>
    %c3 = arith.constant 3 : index
    %c0_22 = arith.constant 0 : index
    %27 = vector.load %arg8[%c3, %c0_22] : memref<9x32xf32, #tpu.memory_space<vmem>>, vector<1x16xf32>
    %28 = vector.broadcast %27 : vector<1x16xf32> to vector<8x16xf32>
    %29 = arith.addf %26, %28 : vector<8x16xf32>
    %c1_23 = arith.constant 1 : index
    %c0_24 = arith.constant 0 : index
    %c0_25 = arith.constant 0 : index
    %30 = vector.load %arg5[%c1_23, %c0_24, %c0_25] : memref<2x32x16xf32, #tpu.memory_space<vmem>>, vector<1x32x16xf32>
    %31 = vector.shape_cast %30 : vector<1x32x16xf32> to vector<32x16xf32>
    %cst_26 = arith.constant dense<0.000000e+00> : vector<8x16xf32>
    %32 = tpu.matmul %23, %31, %cst_26 {dimension_numbers = #tpu.dot_dimension_numbers<[1], [0], [0], [1], [0, 0, 1, 1], [], []>} : vector<8x32xf32>, vector<32x16xf32>, vector<8x16xf32> -> vector<8x16xf32>
    %c4 = arith.constant 4 : index
    %c0_27 = arith.constant 0 : index
    %33 = vector.load %arg8[%c4, %c0_27] : memref<9x32xf32, #tpu.memory_space<vmem>>, vector<1x16xf32>
    %34 = vector.broadcast %33 : vector<1x16xf32> to vector<8x16xf32>
    %35 = arith.addf %32, %34 : vector<8x16xf32>
    %c0_28 = arith.constant 0 : index
    %c0_29 = arith.constant 0 : index
    %36 = vector.load %arg2[%c0_28, %c0_29] : memref<8x16xf32, #tpu.memory_space<vmem>>, vector<8x16xf32>
    %cst_30 = arith.constant 5.000000e-01 : f32
    %37 = vector.broadcast %cst_30 : f32 to vector<8x16xf32>
    %38 = arith.mulf %37, %35 : vector<8x16xf32>
    %39 = math.exp %38 : vector<8x16xf32>
    %40 = arith.mulf %36, %39 : vector<8x16xf32>
    %41 = arith.addf %29, %40 : vector<8x16xf32>
    %c0_31 = arith.constant 0 : index
    %c0_32 = arith.constant 0 : index
    %42 = vector.load %arg6[%c0_31, %c0_32] : memref<16x32xf32, #tpu.memory_space<vmem>>, vector<16x32xf32>
    %cst_33 = arith.constant dense<0.000000e+00> : vector<8x32xf32>
    %43 = tpu.matmul %41, %42, %cst_33 {dimension_numbers = #tpu.dot_dimension_numbers<[1], [0], [0], [1], [0, 0, 1, 1], [], []>} : vector<8x16xf32>, vector<16x32xf32>, vector<8x32xf32> -> vector<8x32xf32>
    %c5 = arith.constant 5 : index
    %c0_34 = arith.constant 0 : index
    %44 = vector.load %arg8[%c5, %c0_34] : memref<9x32xf32, #tpu.memory_space<vmem>>, vector<1x32xf32>
    %45 = vector.broadcast %44 : vector<1x32xf32> to vector<8x32xf32>
    %46 = arith.addf %43, %45 : vector<8x32xf32>
    %cst_35 = arith.constant 0.000000e+00 : f32
    %47 = vector.broadcast %cst_35 : f32 to vector<8x32xf32>
    %48 = arith.maximumf %46, %47 : vector<8x32xf32>
    %c2_36 = arith.constant 2 : index
    %c0_37 = arith.constant 0 : index
    %c0_38 = arith.constant 0 : index
    %49 = vector.load %arg4[%c2_36, %c0_37, %c0_38] : memref<4x32x32xf32, #tpu.memory_space<vmem>>, vector<1x32x32xf32>
    %50 = vector.shape_cast %49 : vector<1x32x32xf32> to vector<32x32xf32>
    %cst_39 = arith.constant dense<0.000000e+00> : vector<8x32xf32>
    %51 = tpu.matmul %48, %50, %cst_39 {dimension_numbers = #tpu.dot_dimension_numbers<[1], [0], [0], [1], [0, 0, 1, 1], [], []>} : vector<8x32xf32>, vector<32x32xf32>, vector<8x32xf32> -> vector<8x32xf32>
    %c6 = arith.constant 6 : index
    %c0_40 = arith.constant 0 : index
    %52 = vector.load %arg8[%c6, %c0_40] : memref<9x32xf32, #tpu.memory_space<vmem>>, vector<1x32xf32>
    %53 = vector.broadcast %52 : vector<1x32xf32> to vector<8x32xf32>
    %54 = arith.addf %51, %53 : vector<8x32xf32>
    %cst_41 = arith.constant 0.000000e+00 : f32
    %55 = vector.broadcast %cst_41 : f32 to vector<8x32xf32>
    %56 = arith.maximumf %54, %55 : vector<8x32xf32>
    %c3_42 = arith.constant 3 : index
    %c0_43 = arith.constant 0 : index
    %c0_44 = arith.constant 0 : index
    %57 = vector.load %arg4[%c3_42, %c0_43, %c0_44] : memref<4x32x32xf32, #tpu.memory_space<vmem>>, vector<1x32x32xf32>
    %58 = vector.shape_cast %57 : vector<1x32x32xf32> to vector<32x32xf32>
    %cst_45 = arith.constant dense<0.000000e+00> : vector<8x32xf32>
    %59 = tpu.matmul %56, %58, %cst_45 {dimension_numbers = #tpu.dot_dimension_numbers<[1], [0], [0], [1], [0, 0, 1, 1], [], []>} : vector<8x32xf32>, vector<32x32xf32>, vector<8x32xf32> -> vector<8x32xf32>
    %c7 = arith.constant 7 : index
    %c0_46 = arith.constant 0 : index
    %60 = vector.load %arg8[%c7, %c0_46] : memref<9x32xf32, #tpu.memory_space<vmem>>, vector<1x32xf32>
    %61 = vector.broadcast %60 : vector<1x32xf32> to vector<8x32xf32>
    %62 = arith.addf %59, %61 : vector<8x32xf32>
    %cst_47 = arith.constant 0.000000e+00 : f32
    %63 = vector.broadcast %cst_47 : f32 to vector<8x32xf32>
    %64 = arith.maximumf %62, %63 : vector<8x32xf32>
    %c0_48 = arith.constant 0 : index
    %c0_49 = arith.constant 0 : index
    %65 = vector.load %arg7[%c0_48, %c0_49] : memref<8x32xf32, #tpu.memory_space<vmem>>, vector<8x32xf32>
    %cst_50 = arith.constant dense<0.000000e+00> : vector<8x8xf32>
    %66 = tpu.matmul %65, %64, %cst_50 {dimension_numbers = #tpu.dot_dimension_numbers<[1], [1], [0], [0], [0, 0, 1, 0], [], []>} : vector<8x32xf32>, vector<8x32xf32>, vector<8x8xf32> -> vector<8x8xf32>
    %67 = vector.extract_strided_slice %66 {offsets = [0, 0], sizes = [1, 8], strides = [1, 1]} : vector<8x8xf32> to vector<1x8xf32>
    %c8 = arith.constant 8 : index
    %c0_51 = arith.constant 0 : index
    %68 = vector.load %arg8[%c8, %c0_51] : memref<9x32xf32, #tpu.memory_space<vmem>>, vector<1x1xf32>
    %69 = vector.broadcast %68 : vector<1x1xf32> to vector<1x8xf32>
    %70 = arith.addf %67, %69 : vector<1x8xf32>
    %cst_52 = arith.constant 5.000000e-01 : f32
    %71 = vector.broadcast %cst_52 : f32 to vector<1x8xf32>
    %72 = arith.mulf %71, %70 : vector<1x8xf32>
    %73 = math.tanh %72 : vector<1x8xf32>
    %cst_53 = arith.constant 1.000000e+00 : f32
    %74 = vector.broadcast %cst_53 : f32 to vector<1x8xf32>
    %75 = arith.addf %73, %74 : vector<1x8xf32>
    %cst_54 = arith.constant 5.000000e-01 : f32
    %76 = vector.broadcast %cst_54 : f32 to vector<1x8xf32>
    %77 = arith.mulf %76, %75 : vector<1x8xf32>
    %c0_55 = arith.constant 0 : index
    %c0_56 = arith.constant 0 : index
    %c0_57 = arith.constant 0 : index
    %78 = vector.load %arg9[%c0_55, %c0_56, %c0_57] : memref<1x1x8xf32, #tpu.memory_space<vmem>>, vector<1x1x8xf32>
    %79 = vector.shape_cast %78 : vector<1x1x8xf32> to vector<1x8xf32>
    %80 = vector.shape_cast %77 : vector<1x8xf32> to vector<1x1x8xf32>
    tpu.vector_store %arg9[%c0_55, %c0_56, %c0_57], %80 {strides = array<i32>} : memref<1x1x8xf32, #tpu.memory_space<vmem>>, vector<1x1x8xf32>,
    return
  }
  func.func @transform_0(%arg0: i32) -> (i32, i32) {
    %c0_i32 = arith.constant 0 : i32
    %c0_i32_0 = arith.constant 0 : i32
    return %arg0, %c0_i32 : i32, i32
  }
  func.func @transform_1(%arg0: i32) -> (i32, i32) {
    %c0_i32 = arith.constant 0 : i32
    %c0_i32_0 = arith.constant 0 : i32
    return %arg0, %c0_i32 : i32, i32
  }
  func.func @transform_2(%arg0: i32) -> (i32, i32) {
    %c0_i32 = arith.constant 0 : i32
    %c0_i32_0 = arith.constant 0 : i32
    %c0_i32_1 = arith.constant 0 : i32
    return %c0_i32, %c0_i32_0 : i32, i32
  }
  func.func @transform_3(%arg0: i32) -> (i32, i32, i32) {
    %c0_i32 = arith.constant 0 : i32
    %c0_i32_0 = arith.constant 0 : i32
    %c0_i32_1 = arith.constant 0 : i32
    %c0_i32_2 = arith.constant 0 : i32
    return %c0_i32, %c0_i32_0, %c0_i32_1 : i32, i32, i32
  }
  func.func @transform_4(%arg0: i32) -> (i32, i32, i32) {
    %c0_i32 = arith.constant 0 : i32
    %c0_i32_0 = arith.constant 0 : i32
    %c0_i32_1 = arith.constant 0 : i32
    %c0_i32_2 = arith.constant 0 : i32
    return %c0_i32, %c0_i32_0, %c0_i32_1 : i32, i32, i32
  }
  func.func @transform_5(%arg0: i32) -> (i32, i32) {
    %c0_i32 = arith.constant 0 : i32
    %c0_i32_0 = arith.constant 0 : i32
    %c0_i32_1 = arith.constant 0 : i32
    return %c0_i32, %c0_i32_0 : i32, i32
  }
  func.func @transform_6(%arg0: i32) -> (i32, i32) {
    %c0_i32 = arith.constant 0 : i32
    %c0_i32_0 = arith.constant 0 : i32
    %c0_i32_1 = arith.constant 0 : i32
    return %c0_i32, %c0_i32_0 : i32, i32
  }
  func.func @transform_7(%arg0: i32) -> (i32, i32) {
    %c0_i32 = arith.constant 0 : i32
    %c0_i32_0 = arith.constant 0 : i32
    %c0_i32_1 = arith.constant 0 : i32
    return %c0_i32, %c0_i32_0 : i32, i32
  }
  func.func @transform_8(%arg0: i32) -> (i32, i32, i32) {
    %c0_i32 = arith.constant 0 : i32
    %c0_i32_0 = arith.constant 0 : i32
    %c0_i32_1 = arith.constant 0 : i32
    return %arg0, %c0_i32, %c0_i32_0 : i32, i32, i32
  }
}

module attributes {stable_mosaic.version = 11 : i64} {
  func.func @_critic_kernel(%arg0: i32, %arg1: memref<8x6xf32, #tpu.memory_space<vmem>>, %arg2: memref<8x16xf32, #tpu.memory_space<vmem>>, %arg3: memref<6x32xf32, #tpu.memory_space<vmem>>, %arg4: memref<4x32x32xf32, #tpu.memory_space<vmem>>, %arg5: memref<2x32x16xf32, #tpu.memory_space<vmem>>, %arg6: memref<16x32xf32, #tpu.memory_space<vmem>>, %arg7: memref<8x32xf32, #tpu.memory_space<vmem>>, %arg8: memref<9x32xf32, #tpu.memory_space<vmem>>, %arg9: memref<1x1x8xf32, #tpu.memory_space<vmem>>) attributes {dimension_semantics = [#tpu.dimension_semantics<parallel>], iteration_bounds = array<i64: 1>, scalar_prefetch = 0 : i64, scratch_operands = 0 : i64, tpu.core_type = #tpu.core_type<tc>, window_params = [{transform_indices = @transform_0, window_bounds = array<i64: 8, 6>}, {transform_indices = @transform_1, window_bounds = array<i64: 8, 16>}, {pipeline_mode = #tpu.pipeline_mode<synchronous>, transform_indices = @transform_2, window_bounds = array<i64: 6, 32>}, {pipeline_mode = #tpu.pipeline_mode<synchronous>, transform_indices = @transform_3, window_bounds = array<i64: 4, 32, 32>}, {pipeline_mode = #tpu.pipeline_mode<synchronous>, transform_indices = @transform_4, window_bounds = array<i64: 2, 32, 16>}, {pipeline_mode = #tpu.pipeline_mode<synchronous>, transform_indices = @transform_5, window_bounds = array<i64: 16, 32>}, {pipeline_mode = #tpu.pipeline_mode<synchronous>, transform_indices = @transform_6, window_bounds = array<i64: 8, 32>}, {pipeline_mode = #tpu.pipeline_mode<synchronous>, transform_indices = @transform_7, window_bounds = array<i64: 9, 32>}, {transform_indices = @transform_8, window_bounds = array<i64: 1, 1, 8>}]} {
    %c0 = arith.constant 0 : index
    %c0_0 = arith.constant 0 : index
    %0 = vector.load %arg1[%c0, %c0_0] : memref<8x6xf32, #tpu.memory_space<vmem>>, vector<8x6xf32>
    %c0_1 = arith.constant 0 : index
    %c0_2 = arith.constant 0 : index
    %1 = vector.load %arg3[%c0_1, %c0_2] : memref<6x32xf32, #tpu.memory_space<vmem>>, vector<6x32xf32>
    %cst = arith.constant dense<0.000000e+00> : vector<8x32xf32>
    %2 = tpu.matmul %0, %1, %cst {dimension_numbers = #tpu.dot_dimension_numbers<[1], [0], [0], [1], [0, 0, 1, 1], [], []>} : vector<8x6xf32>, vector<6x32xf32>, vector<8x32xf32> -> vector<8x32xf32>
    %c0_3 = arith.constant 0 : index
    %c0_4 = arith.constant 0 : index
    %3 = vector.load %arg8[%c0_3, %c0_4] : memref<9x32xf32, #tpu.memory_space<vmem>>, vector<1x32xf32>
    %4 = vector.broadcast %3 : vector<1x32xf32> to vector<8x32xf32>
    %5 = arith.addf %2, %4 : vector<8x32xf32>
    %cst_5 = arith.constant 0.000000e+00 : f32
    %6 = vector.broadcast %cst_5 : f32 to vector<8x32xf32>
    %7 = arith.maximumf %5, %6 : vector<8x32xf32>
    %c0_6 = arith.constant 0 : index
    %c0_7 = arith.constant 0 : index
    %c0_8 = arith.constant 0 : index
    %8 = vector.load %arg4[%c0_6, %c0_7, %c0_8] : memref<4x32x32xf32, #tpu.memory_space<vmem>>, vector<1x32x32xf32>
    %9 = vector.shape_cast %8 : vector<1x32x32xf32> to vector<32x32xf32>
    %cst_9 = arith.constant dense<0.000000e+00> : vector<8x32xf32>
    %10 = tpu.matmul %7, %9, %cst_9 {dimension_numbers = #tpu.dot_dimension_numbers<[1], [0], [0], [1], [0, 0, 1, 1], [], []>} : vector<8x32xf32>, vector<32x32xf32>, vector<8x32xf32> -> vector<8x32xf32>
    %c1 = arith.constant 1 : index
    %c0_10 = arith.constant 0 : index
    %11 = vector.load %arg8[%c1, %c0_10] : memref<9x32xf32, #tpu.memory_space<vmem>>, vector<1x32xf32>
    %12 = vector.broadcast %11 : vector<1x32xf32> to vector<8x32xf32>
    %13 = arith.addf %10, %12 : vector<8x32xf32>
    %cst_11 = arith.constant 0.000000e+00 : f32
    %14 = vector.broadcast %cst_11 : f32 to vector<8x32xf32>
    %15 = arith.maximumf %13, %14 : vector<8x32xf32>
    %c1_12 = arith.constant 1 : index
    %c0_13 = arith.constant 0 : index
    %c0_14 = arith.constant 0 : index
    %16 = vector.load %arg4[%c1_12, %c0_13, %c0_14] : memref<4x32x32xf32, #tpu.memory_space<vmem>>, vector<1x32x32xf32>
    %17 = vector.shape_cast %16 : vector<1x32x32xf32> to vector<32x32xf32>
    %cst_15 = arith.constant dense<0.000000e+00> : vector<8x32xf32>
    %18 = tpu.matmul %15, %17, %cst_15 {dimension_numbers = #tpu.dot_dimension_numbers<[1], [0], [0], [1], [0, 0, 1, 1], [], []>} : vector<8x32xf32>, vector<32x32xf32>, vector<8x32xf32> -> vector<8x32xf32>
    %c2 = arith.constant 2 : index
    %c0_16 = arith.constant 0 : index
    %19 = vector.load %arg8[%c2, %c0_16] : memref<9x32xf32, #tpu.memory_space<vmem>>, vector<1x32xf32>
    %20 = vector.broadcast %19 : vector<1x32xf32> to vector<8x32xf32>
    %21 = arith.addf %18, %20 : vector<8x32xf32>
    %cst_17 = arith.constant 0.000000e+00 : f32
    %22 = vector.broadcast %cst_17 : f32 to vector<8x32xf32>
    %23 = arith.maximumf %21, %22 : vector<8x32xf32>
    %c0_18 = arith.constant 0 : index
    %c0_19 = arith.constant 0 : index
    %c0_20 = arith.constant 0 : index
    %24 = vector.load %arg5[%c0_18, %c0_19, %c0_20] : memref<2x32x16xf32, #tpu.memory_space<vmem>>, vector<1x32x16xf32>
    %25 = vector.shape_cast %24 : vector<1x32x16xf32> to vector<32x16xf32>
    %cst_21 = arith.constant dense<0.000000e+00> : vector<8x16xf32>
    %26 = tpu.matmul %23, %25, %cst_21 {dimension_numbers = #tpu.dot_dimension_numbers<[1], [0], [0], [1], [0, 0, 1, 1], [], []>} : vector<8x32xf32>, vector<32x16xf32>, vector<8x16xf32> -> vector<8x16xf32>
    %c3 = arith.constant 3 : index
    %c0_22 = arith.constant 0 : index
    %27 = vector.load %arg8[%c3, %c0_22] : memref<9x32xf32, #tpu.memory_space<vmem>>, vector<1x16xf32>
    %28 = vector.broadcast %27 : vector<1x16xf32> to vector<8x16xf32>
    %29 = arith.addf %26, %28 : vector<8x16xf32>
    %c1_23 = arith.constant 1 : index
    %c0_24 = arith.constant 0 : index
    %c0_25 = arith.constant 0 : index
    %30 = vector.load %arg5[%c1_23, %c0_24, %c0_25] : memref<2x32x16xf32, #tpu.memory_space<vmem>>, vector<1x32x16xf32>
    %31 = vector.shape_cast %30 : vector<1x32x16xf32> to vector<32x16xf32>
    %cst_26 = arith.constant dense<0.000000e+00> : vector<8x16xf32>
    %32 = tpu.matmul %23, %31, %cst_26 {dimension_numbers = #tpu.dot_dimension_numbers<[1], [0], [0], [1], [0, 0, 1, 1], [], []>} : vector<8x32xf32>, vector<32x16xf32>, vector<8x16xf32> -> vector<8x16xf32>
    %c4 = arith.constant 4 : index
    %c0_27 = arith.constant 0 : index
    %33 = vector.load %arg8[%c4, %c0_27] : memref<9x32xf32, #tpu.memory_space<vmem>>, vector<1x16xf32>
    %34 = vector.broadcast %33 : vector<1x16xf32> to vector<8x16xf32>
    %35 = arith.addf %32, %34 : vector<8x16xf32>
    %c0_28 = arith.constant 0 : index
    %c0_29 = arith.constant 0 : index
    %36 = vector.load %arg2[%c0_28, %c0_29] : memref<8x16xf32, #tpu.memory_space<vmem>>, vector<8x16xf32>
    %cst_30 = arith.constant 5.000000e-01 : f32
    %37 = vector.broadcast %cst_30 : f32 to vector<8x16xf32>
    %38 = arith.mulf %37, %35 : vector<8x16xf32>
    %39 = math.exp %38 : vector<8x16xf32>
    %40 = arith.mulf %36, %39 : vector<8x16xf32>
    %41 = arith.addf %29, %40 : vector<8x16xf32>
    %c0_31 = arith.constant 0 : index
    %c0_32 = arith.constant 0 : index
    %42 = vector.load %arg6[%c0_31, %c0_32] : memref<16x32xf32, #tpu.memory_space<vmem>>, vector<16x32xf32>
    %cst_33 = arith.constant dense<0.000000e+00> : vector<8x32xf32>
    %43 = tpu.matmul %41, %42, %cst_33 {dimension_numbers = #tpu.dot_dimension_numbers<[1], [0], [0], [1], [0, 0, 1, 1], [], []>} : vector<8x16xf32>, vector<16x32xf32>, vector<8x32xf32> -> vector<8x32xf32>
    %c5 = arith.constant 5 : index
    %c0_34 = arith.constant 0 : index
    %44 = vector.load %arg8[%c5, %c0_34] : memref<9x32xf32, #tpu.memory_space<vmem>>, vector<1x32xf32>
    %45 = vector.broadcast %44 : vector<1x32xf32> to vector<8x32xf32>
    %46 = arith.addf %43, %45 : vector<8x32xf32>
    %cst_35 = arith.constant 0.000000e+00 : f32
    %47 = vector.broadcast %cst_35 : f32 to vector<8x32xf32>
    %48 = arith.maximumf %46, %47 : vector<8x32xf32>
    %c2_36 = arith.constant 2 : index
    %c0_37 = arith.constant 0 : index
    %c0_38 = arith.constant 0 : index
    %49 = vector.load %arg4[%c2_36, %c0_37, %c0_38] : memref<4x32x32xf32, #tpu.memory_space<vmem>>, vector<1x32x32xf32>
    %50 = vector.shape_cast %49 : vector<1x32x32xf32> to vector<32x32xf32>
    %cst_39 = arith.constant dense<0.000000e+00> : vector<8x32xf32>
    %51 = tpu.matmul %48, %50, %cst_39 {dimension_numbers = #tpu.dot_dimension_numbers<[1], [0], [0], [1], [0, 0, 1, 1], [], []>} : vector<8x32xf32>, vector<32x32xf32>, vector<8x32xf32> -> vector<8x32xf32>
    %c6 = arith.constant 6 : index
    %c0_40 = arith.constant 0 : index
    %52 = vector.load %arg8[%c6, %c0_40] : memref<9x32xf32, #tpu.memory_space<vmem>>, vector<1x32xf32>
    %53 = vector.broadcast %52 : vector<1x32xf32> to vector<8x32xf32>
    %54 = arith.addf %51, %53 : vector<8x32xf32>
    %cst_41 = arith.constant 0.000000e+00 : f32
    %55 = vector.broadcast %cst_41 : f32 to vector<8x32xf32>
    %56 = arith.maximumf %54, %55 : vector<8x32xf32>
    %c3_42 = arith.constant 3 : index
    %c0_43 = arith.constant 0 : index
    %c0_44 = arith.constant 0 : index
    %57 = vector.load %arg4[%c3_42, %c0_43, %c0_44] : memref<4x32x32xf32, #tpu.memory_space<vmem>>, vector<1x32x32xf32>
    %58 = vector.shape_cast %57 : vector<1x32x32xf32> to vector<32x32xf32>
    %cst_45 = arith.constant dense<0.000000e+00> : vector<8x32xf32>
    %59 = tpu.matmul %56, %58, %cst_45 {dimension_numbers = #tpu.dot_dimension_numbers<[1], [0], [0], [1], [0, 0, 1, 1], [], []>} : vector<8x32xf32>, vector<32x32xf32>, vector<8x32xf32> -> vector<8x32xf32>
    %c7 = arith.constant 7 : index
    %c0_46 = arith.constant 0 : index
    %60 = vector.load %arg8[%c7, %c0_46] : memref<9x32xf32, #tpu.memory_space<vmem>>, vector<1x32xf32>
    %61 = vector.broadcast %60 : vector<1x32xf32> to vector<8x32xf32>
    %62 = arith.addf %59, %61 : vector<8x32xf32>
    %cst_47 = arith.constant 0.000000e+00 : f32
    %63 = vector.broadcast %cst_47 : f32 to vector<8x32xf32>
    %64 = arith.maximumf %62, %63 : vector<8x32xf32>
    %c0_48 = arith.constant 0 : index
    %c0_49 = arith.constant 0 : index
    %65 = vector.load %arg7[%c0_48, %c0_49] : memref<8x32xf32, #tpu.memory_space<vmem>>, vector<8x32xf32>
    %cst_50 = arith.constant dense<0.000000e+00> : vector<8x8xf32>
    %66 = tpu.matmul %65, %64, %cst_50 {dimension_numbers = #tpu.dot_dimension_numbers<[1], [1], [0], [0], [0, 0, 1, 0], [], []>} : vector<8x32xf32>, vector<8x32xf32>, vector<8x8xf32> -> vector<8x8xf32>
    %67 = vector.extract_strided_slice %66 {offsets = [0, 0], sizes = [1, 8], strides = [1, 1]} : vector<8x8xf32> to vector<1x8xf32>
    %c8 = arith.constant 8 : index
    %c0_51 = arith.constant 0 : index
    %68 = vector.load %arg8[%c8, %c0_51] : memref<9x32xf32, #tpu.memory_space<vmem>>, vector<1x1xf32>
    %69 = vector.broadcast %68 : vector<1x1xf32> to vector<1x8xf32>
    %70 = arith.addf %67, %69 : vector<1x8xf32>
    %cst_52 = arith.constant 5.000000e-01 : f32
    %71 = vector.broadcast %cst_52 : f32 to vector<1x8xf32>
    %72 = arith.mulf %71, %70 : vector<1x8xf32>
    %73 = math.tanh %72 : vector<1x8xf32>
    %cst_53 = arith.constant 1.000000e+00 : f32
    %74 = vector.broadcast %cst_53 : f32 to vector<1x8xf32>
    %75 = arith.addf %73, %74 : vector<1x8xf32>
    %cst_54 = arith.constant 5.000000e-01 : f32
    %76 = vector.broadcast %cst_54 : f32 to vector<1x8xf32>
    %77 = arith.mulf %76, %75 : vector<1x8xf32>
    %c0_55 = arith.constant 0 : index
    %c0_56 = arith.constant 0 : index
    %c0_57 = arith.constant 0 : index
    %78 = vector.load %arg9[%c0_55, %c0_56, %c0_57] : memref<1x1x8xf32, #tpu.memory_space<vmem>>, vector<1x1x8xf32>
    %79 = vector.shape_cast %78 : vector<1x1x8xf32> to vector<1x8xf32>
    %80 = vector.shape_cast %77 : vector<1x8xf32> to vector<1x1x8xf32>
    tpu.vector_store %arg9[%c0_55, %c0_56, %c0_57], %80 {strides = array<i32>} : memref<1x1x8xf32, #tpu.memory_space<vmem>>, vector<1x1x8xf32>,
    return
  }
  func.func @transform_0(%arg0: i32) -> (i32, i32) {
    %c0_i32 = arith.constant 0 : i32
    %c0_i32_0 = arith.constant 0 : i32
    return %arg0, %c0_i32 : i32, i32
  }
  func.func @transform_1(%arg0: i32) -> (i32, i32) {
    %c0_i32 = arith.constant 0 : i32
    %c0_i32_0 = arith.constant 0 : i32
    return %arg0, %c0_i32 : i32, i32
  }
  func.func @transform_2(%arg0: i32) -> (i32, i32) {
    %c0_i32 = arith.constant 0 : i32
    %c0_i32_0 = arith.constant 0 : i32
    %c0_i32_1 = arith.constant 0 : i32
    return %c0_i32, %c0_i32_0 : i32, i32
  }
  func.func @transform_3(%arg0: i32) -> (i32, i32, i32) {
    %c0_i32 = arith.constant 0 : i32
    %c0_i32_0 = arith.constant 0 : i32
    %c0_i32_1 = arith.constant 0 : i32
    %c0_i32_2 = arith.constant 0 : i32
    return %c0_i32, %c0_i32_0, %c0_i32_1 : i32, i32, i32
  }
  func.func @transform_4(%arg0: i32) -> (i32, i32, i32) {
    %c0_i32 = arith.constant 0 : i32
    %c0_i32_0 = arith.constant 0 : i32
    %c0_i32_1 = arith.constant 0 : i32
    %c0_i32_2 = arith.constant 0 : i32
    return %c0_i32, %c0_i32_0, %c0_i32_1 : i32, i32, i32
  }
  func.func @transform_5(%arg0: i32) -> (i32, i32) {
    %c0_i32 = arith.constant 0 : i32
    %c0_i32_0 = arith.constant 0 : i32
    %c0_i32_1 = arith.constant 0 : i32
    return %c0_i32, %c0_i32_0 : i32, i32
  }
  func.func @transform_6(%arg0: i32) -> (i32, i32) {
    %c0_i32 = arith.constant 0 : i32
    %c0_i32_0 = arith.constant 0 : i32
    %c0_i32_1 = arith.constant 0 : i32
    return %c0_i32, %c0_i32_0 : i32, i32
  }
  func.func @transform_7(%arg0: i32) -> (i32, i32) {
    %c0_i32 = arith.constant 0 : i32
    %c0_i32_0 = arith.constant 0 : i32
    %c0_i32_1 = arith.constant 0 : i32
    return %c0_i32, %c0_i32_0 : i32, i32
  }
  func.func @transform_8(%arg0: i32) -> (i32, i32, i32) {
    %c0_i32 = arith.constant 0 : i32
    %c0_i32_0 = arith.constant 0 : i32
    %c0_i32_1 = arith.constant 0 : i32
    return %arg0, %c0_i32, %c0_i32_0 : i32, i32, i32
  }
}

</mosaic_0001>

<bundles_post_ra>
// kernel: tpu_custom_call.1
= control target key start
LH: loop header
LB: loop body
LE: loop exit
PB: predicated region body
PF: predicated region fallthrough
CT: control target
= control target key end

     0   :  { %13 = vsyncpa [#allocation3], 0  ;;  %s1201_s0 = inlined_call_operand.vmem [shape: f32[8,6], index: 0, kind: input, shape index: {}]   ;;  %s1202_s1 = inlined_call_operand.vmem [shape: f32[8,16], index: 1, kind: input, shape index: {}]   ;;  %s1203_s2 = inlined_call_operand.vmem [shape: f32[6,32], index: 2, kind: input, shape index: {}]   ;;  %s1204_s3 = inlined_call_operand.hbm [shape: f32[4,32,32], index: 3, kind: input, shape index: {}]   ;;  %s1205_s4 = inlined_call_operand.vmem [shape: f32[2,32,16], index: 4, kind: input, shape index: {}]   ;;  %s1206_s5 = inlined_call_operand.vmem [shape: f32[16,32], index: 5, kind: input, shape index: {}]   ;;  %s1207_s6 = inlined_call_operand.vmem [shape: f32[8,32], index: 6, kind: input, shape index: {}]   ;;  %s1208_s7 = inlined_call_operand.vmem [shape: f32[9,32], index: 7, kind: input, shape index: {}]   ;;  %s1209_s8 = inlined_call_operand.hbm [shape: f32[1,1,8], index: 8, kind: output, shape index: {}]  }
   0x1   :  { %14 = vsyncpa [#allocation4], 0  ;;  %s1020_s27 = smov [#allocation2]  }
   0x2   :  { %s26_s28 = sshll.u32 %s1020_s27, 4  ;;  %s27_s28 = int_to_ptr.vmem [resolvable:$true] %s26_s28 }
   0x3   :  { %s984_s29 = scalar_lea.vmem %s27_s28, 2048  ;;  %p989_p1 = scmp.lt.s32.totalorder %s27_s28, %s27_s28 }
   0x4   :  { %p985_p0 = scmp.ne.s32.totalorder %s27_s28, %s984_s29  ;;  %p990_p2 = scmp.lt.s32.totalorder %s984_s29, %s984_s29 }
   0x6   :  { %p991_p3 = por %p990_p2, %p989_p1 }
   0x8   :  { %p992_p4 = pnand %p991_p3, %p985_p0 }
   0xa   :  { %995 = shalt.err (!%p992_p4)
}
   0xb   :  { %s1021_s30 = smov 128   ;;  %s1022_s9 = smov 8  }
   0xc   :  { %32 = dma.hbm_to_vmem [thread:$0]  %s1204_s3, 2048, %s27_s28, [#allocation3], %s1021_s30, %s1021_s30, %s1022_s9  }
   0xd   :  { %1016 = dma.done.wait [#allocation3], 2048  }
   0xe   :  { %1017 = vsyncadd [#allocation3], 4294965248  ;;  %v1023_v0 = vmov 0.0   ;;  %vm1024_vm0 = vmmov 0   ;;  %vm55_vm1 = vcmask 1045504   ;;  %vm51_vm2 = vcmask 48128  }
   0xf   :  { %881 = vmatprep.subr.mxu0 %v1023_v0  ;;  %883 = vmatprep.mubr.msk.f32.mxu0 %vm1024_vm0, %v1023_v0  ;;  %v45_v1 = vld [vmem:[%s1203_s2] sm:$0x3f]  ;;  %v133_v3 = vld [vmem:[#allocation2 + $0x18] sm:$0xff]  ;;  %v132_v4 = vld [vmem:[#allocation2 + $0x10] sm:$0xff]  ;;  %vm139_vm3 = vcmask 261120   ;;  %vm473_vm4 = vcmask 130048  }
  0x10   :  { %886 = vmatprep.subr.mxu1 %v1023_v0  ;;  %894 = vmatprep.mubr.msk.f32.mxu1 %vm1024_vm0, %v1023_v0  ;;  %v44_v2 = vld [vmem:[%s1201_s0] sm:$0xff]  ;;  %v131_v5 = vld [vmem:[#allocation2 + $0x8] sm:$0xff]  ;;  %v218_v7 = vld [vmem:[#allocation2 + $0x38] sm:$0xff]  ;;  %vm804_vm5 = vcmask 57344  }
  0x11   :  { %882 = vmatpush3.msk.msra.mxu0 %vm55_vm1, %v45_v1  ;;  %887 = vmatpush3.msra.mxu1 %v133_v3  ;;  %v130_v6 = vld [vmem:[#allocation2] sm:$0xff]  ;;  %v217_v13 = vld [vmem:[#allocation2 + $0x30] sm:$0xff]  ;;  %v216_v14 = vld [vmem:[#allocation2 + $0x28] sm:$0xff] }
  0x12   :  { %884 = vmatmul.mubr.msk.f32.vlgmr.msra.gmra.mxu0 %vm51_vm2, %v44_v2  ;;  %888 = vmatprep.subr.mxu1 %v1023_v0  ;;  %v821_v8 = vld [vmem:[%s1208_s7] ss:$0 sm:$0xff]  ;;  %v301_v16 = vld [vmem:[%s1205_s4 + $0x18] sm:$0xff]  ;;  %v824_v17 = vld [vmem:[%s1208_s7 + $0x1] ss:$0 sm:$0xff] }
  0x13   :  { %897 = vmatprep.subr.mxu0 %v1023_v0  ;;  %905 = vmatprep.mubr.msk.f32.mxu0 %vm1024_vm0, %v1023_v0  ;;  %v215_v15 = vld [vmem:[#allocation2 + $0x20] sm:$0xff]  ;;  %v833_v22 = vld [vmem:[%s1205_s4 + $0x38] sm:$0xff]  ;;  %v300_v23 = vld [vmem:[%s1205_s4 + $0x10] sm:$0xff] }
  0x14   :  { %889 = vmatpush3.msra.mxu1 %v132_v4  ;;  %898 = vmatpush3.msra.mxu0 %v218_v7  ;;  %v832_v24 = vld [vmem:[%s1205_s4 + $0x30] sm:$0xff]  ;;  %v299_v25 = vld [vmem:[%s1205_s4 + $0x8] sm:$0xff]  ;;  %v298_v27 = vld [vmem:[%s1205_s4] sm:$0xff] }
  0x15   :  { %890 = vmatprep.subr.mxu1 %v1023_v0  ;;  %899 = vmatprep.subr.mxu0 %v1023_v0  ;;  %v831_v26 = vld [vmem:[%s1205_s4 + $0x28] sm:$0xff]  ;;  %v830_v28 = vld [vmem:[%s1205_s4 + $0x20] sm:$0xff]  ;;  %v552_v36 = vld [vmem:[#allocation2 + $0x58] sm:$0xff] }
  0x16   :  { %891 = vmatpush3.msra.mxu1 %v131_v5  ;;  %900 = vmatpush3.msra.mxu0 %v217_v13  ;;  %v826_v29 = vld [vmem:[%s1208_s7 + $0x2] ss:$0 sm:$0xff]  ;;  %v467_v34 = vld [vmem:[%s1206_s5 + $0x8] sm:$0xff]  ;;  %v834_v37 = vld [vmem:[%s1208_s7 + $0x4] ss:$0 sm:$0xff] }
  0x17   :  { %892 = vmatprep.subr.mxu1 %v1023_v0  ;;  %901 = vmatprep.subr.mxu0 %v1023_v0  ;;  %v466_v35 = vld [vmem:[%s1206_s5] sm:$0xff]  ;;  %v551_v51 = vld [vmem:[#allocation2 + $0x50] sm:$0xff]  ;;  %v550_v52 = vld [vmem:[#allocation2 + $0x48] sm:$0xff] }
  0x18   :  { %893 = vmatpush3.msra.mxu1 %v130_v6  ;;  %902 = vmatpush3.msra.mxu0 %v216_v14  ;;  %v828_v45 = vld [vmem:[%s1208_s7 + $0x3] ss:$0 sm:$0xff]  ;;  %v636_v54 = vld [vmem:[#allocation2 + $0x78] sm:$0xff]  ;;  %v836_v55 = vld [vmem:[%s1208_s7 + $0x5] ss:$0 sm:$0xff]  ;;  %v1025_v6 = vmov 0  }
  0x19   :  { %908 = vmatprep.subr.mxu1 %v1023_v0  ;;  %903 = vmatprep.subr.mxu0 %v1023_v0  ;;  %v460_v46 = vld [vmem:[%s1202_s1] sm:$0xff]  ;;  %v635_v60 = vld [vmem:[#allocation2 + $0x70] sm:$0xff]  ;;  %v634_v61 = vld [vmem:[#allocation2 + $0x68] sm:$0xff] }
  0x1a   :  { %904 = vmatpush3.msra.mxu0 %v215_v15  ;;  %v549_v53 = vld [vmem:[#allocation2 + $0x40] sm:$0xff]  ;;  %v793_v5 = vld [vmem:[%s1208_s7 + $0x8] sm:$0x1]  ;;  %971 = vset.pattern.permute.xlu0 %v1025_v6 }
  0x1b   :  { %919 = vmatprep.subr.mxu0 %v1023_v0  ;;  %v633_v62 = vld [vmem:[#allocation2 + $0x60] sm:$0xff]  ;;  %796 = vperm.xlu0 %971, %v793_v5  }
  0x1c   :  { %v838_v63 = vld [vmem:[%s1208_s7 + $0x6] ss:$0 sm:$0xff] }
  0xd2   :  { %v125_v9 = vpop.f32.mrf.mxu0 }
  0xd3   :  { %v126_v10 = vadd.f32 %v821_v8, %v125_v9 }
  0xd4   :  { %v885_v11 = vpop.f32.mrf.mxu0 }
  0xd5   :  { %v129_v12 = vmax.f32 %v126_v10, 0.0  ;;  %v716_v11 = vld [vmem:[%s1207_s6] sm:$0xff] }
  0xd7   :  { %895 = vmatmul.mubr.msk.f32.vlgmr.msra.gmra.mxu1 %vm139_vm3, %v129_v12  ;;  %v797_v12 = vpop.permute.xlu0 %796 }
  0xd8   :  { %916 = vmatprep.mubr.msk.f32.mxu1 %vm1024_vm0, %v1023_v0  ;;  %909 = vmatpush3.msra.mxu1 %v301_v16 }
  0xd9   :  { %910 = vmatprep.subr.mxu1 %v1023_v0 }
  0xda   :  { %911 = vmatpush3.msra.mxu1 %v300_v23 }
  0xdb   :  { %912 = vmatprep.subr.mxu1 %v1023_v0 }
  0xdc   :  { %913 = vmatpush3.msra.mxu1 %v299_v25 }
  0xdd   :  { %914 = vmatprep.subr.mxu1 %v1023_v0 }
  0xde   :  { %915 = vmatpush3.msra.mxu1 %v298_v27 }
  0xdf   :  { %930 = vmatprep.subr.mxu1 %v1023_v0 }
 0x197   :  { %v209_v18 = vpop.f32.mrf.mxu1 }
 0x198   :  { %v210_v19 = vadd.f32 %v824_v17, %v209_v18 }
 0x199   :  { %v896_v20 = vpop.f32.mrf.mxu1 }
 0x19a   :  { %v213_v21 = vmax.f32 %v210_v19, 0.0 }
 0x19c   :  { %906 = vmatmul.mubr.msk.f32.vlgmr.msra.gmra.mxu0 %vm139_vm3, %v213_v21 }
 0x19d   :  { %920 = vmatpush3.msra.mxu0 %v833_v22  ;;  %927 = vmatprep.mubr.msk.f32.mxu0 %vm1024_vm0, %v1023_v0 }
 0x19e   :  { %921 = vmatprep.subr.mxu0 %v1023_v0 }
 0x19f   :  { %922 = vmatpush3.msra.mxu0 %v832_v24 }
 0x1a0   :  { %923 = vmatprep.subr.mxu0 %v1023_v0 }
 0x1a1   :  { %924 = vmatpush3.msra.mxu0 %v831_v26 }
 0x1a2   :  { %925 = vmatprep.subr.mxu0 %v1023_v0 }
 0x1a3   :  { %926 = vmatpush3.msra.mxu0 %v830_v28 }
 0x1a4   :  { %937 = vmatprep.subr.mxu0 %v1023_v0 }
 0x25c   :  { %v293_v30 = vpop.f32.mrf.mxu0 }
 0x25d   :  { %v294_v31 = vadd.f32 %v826_v29, %v293_v30 }
 0x25e   :  { %v907_v32 = vpop.f32.mrf.mxu0 }
 0x25f   :  { %v297_v33 = vmax.f32 %v294_v31, 0.0 }
 0x261   :  { %917 = vmatmul.mubr.msk.f32.vlgmr.msra.gmra.mxu1 %vm139_vm3, %v297_v33  ;;  %928 = vmatmul.mubr.msk.f32.vlgmr.msra.gmra.mxu0 %vm139_vm3, %v297_v33 }
 0x262   :  { %934 = vmatprep.mubr.msk.f32.mxu1 %vm1024_vm0, %v1023_v0  ;;  %945 = vmatprep.mubr.msk.f32.mxu0 %vm1024_vm0, %v1023_v0 }
 0x263   :  { %931 = vmatpush3.msra.mxu1 %v467_v34  ;;  %938 = vmatpush3.msra.mxu0 %v552_v36 }
 0x264   :  { %932 = vmatprep.subr.mxu1 %v1023_v0  ;;  %939 = vmatprep.subr.mxu0 %v1023_v0 }
 0x265   :  { %933 = vmatpush3.msra.mxu1 %v466_v35  ;;  %940 = vmatpush3.msra.mxu0 %v551_v51 }
 0x266   :  { %948 = vmatprep.subr.mxu1 %v1023_v0  ;;  %941 = vmatprep.subr.mxu0 %v1023_v0 }
 0x267   :  { %942 = vmatpush3.msra.mxu0 %v550_v52 }
 0x268   :  { %943 = vmatprep.subr.mxu0 %v1023_v0 }
 0x269   :  { %944 = vmatpush3.msra.mxu0 %v549_v53 }
 0x26a   :  { %959 = vmatprep.subr.mxu0 %v1023_v0 }
 0x321   :  { %v376_v38 = vpop.f32.mrf.mxu1  ;;  %v456_v39 = vpop.f32.mrf.mxu0 }
 0x322   :  { %v457_v40 = vadd.f32 %v834_v37, %v456_v39  ;;  %v377_v48 = vadd.f32 %v828_v45, %v376_v38 }
 0x323   :  { %v918_v41 = vpop.f32.mrf.mxu1  ;;  %v929_v42 = vpop.f32.mrf.mxu0 }
 0x324   :  { %v461_v43 = vmul.f32 0.5, %v457_v40 }
 0x326   :  { %v462_v44 = vmul.f32 1.442695, %v461_v43 }
 0x328   :  { %972 = vpow2.f32 %v462_v44 }
 0x335   :  { %v973_v47 = vpop.eup %972 }
 0x336   :  { %v464_v49 = vmul.f32 %v973_v47, %v460_v46 }
 0x338   :  { %v465_v50 = vadd.f32 %v464_v49, %v377_v48 }
 0x33a   :  { %935 = vmatmul.mubr.msk.f32.vlgmr.msra.gmra.mxu1 %vm473_vm4, %v465_v50 }
 0x33b   :  { %956 = vmatprep.mubr.msk.f32.mxu1 %vm1024_vm0, %v1023_v0  ;;  %949 = vmatpush3.msra.mxu1 %v636_v54 }
 0x33c   :  { %950 = vmatprep.subr.mxu1 %v1023_v0 }
 0x33d   :  { %951 = vmatpush3.msra.mxu1 %v635_v60 }
 0x33e   :  { %952 = vmatprep.subr.mxu1 %v1023_v0 }
 0x33f   :  { %953 = vmatpush3.msra.mxu1 %v634_v61 }
 0x340   :  { %954 = vmatprep.subr.mxu1 %v1023_v0 }
 0x341   :  { %955 = vmatpush3.msra.mxu1 %v633_v62 }
 0x3fa   :  { %v543_v56 = vpop.f32.mrf.mxu1 }
 0x3fb   :  { %v544_v57 = vadd.f32 %v836_v55, %v543_v56 }
 0x3fc   :  { %v936_v58 = vpop.f32.mrf.mxu1 }
 0x3fd   :  { %v547_v59 = vmax.f32 %v544_v57, 0.0 }
 0x3ff   :  { %946 = vmatmul.mubr.msk.f32.vlgmr.msra.gmra.mxu0 %vm139_vm3, %v547_v59 }
 0x400   :  { %961 = vmatprep.mubr.msk.f32.mxu0 %vm1024_vm0, %v1023_v0  ;;  %v840_v0 = vld [vmem:[%s1208_s7 + $0x7] ss:$0 sm:$0xff]  ;;  %s1026_s7 = smov [#allocation5]  }
 0x401   :  { %s812_s27 = sshll.u32 %s1026_s7, 4  ;;  %s813_s27 = int_to_ptr.vmem [resolvable:$true] %s812_s27 }
 0x402   :  { %s996_s28 = scalar_lea.vmem %s813_s27, 16  ;;  %s1000_s29 = scalar_lea.vmem %s813_s27, 32 }
 0x403   :  { %p997_p5 = scmp.ne.s32.totalorder %s813_s27, %s996_s28  ;;  %p1001_p6 = scmp.lt.s32.totalorder %s813_s27, %s813_s27 }
 0x404   :  { %p1002_p7 = scmp.lt.s32.totalorder %s1000_s29, %s996_s28 }
 0x406   :  { %p1003_p8 = por %p1002_p7, %p1001_p6 }
 0x408   :  { %p1004_p9 = pnand %p1003_p8, %p997_p5 }
 0x4bf   :  { %v627_v1 = vpop.f32.mrf.mxu0 }
 0x4c0   :  { %v628_v2 = vadd.f32 %v838_v63, %v627_v1 }
 0x4c1   :  { %v947_v3 = vpop.f32.mrf.mxu0 }
 0x4c2   :  { %v631_v4 = vmax.f32 %v628_v2, 0.0 }
 0x4c4   :  { %957 = vmatmul.mubr.msk.f32.vlgmr.msra.gmra.mxu1 %vm139_vm3, %v631_v4 }
 0x584   :  { %v711_v7 = vpop.f32.mrf.mxu1 }
 0x585   :  { %v712_v8 = vadd.f32 %v840_v0, %v711_v7 }
 0x586   :  { %v958_v9 = vpop.f32.mrf.mxu1 }
 0x587   :  { %v715_v10 = vmax.f32 %v712_v8, 0.0 }
 0x589   :  { %960 = vmatpush3.xpose.msk.msra.mxu0 %vm139_vm3, %v715_v10 }
 0x58c   :  { %962 = vmatmul.mubr.msk.f32.vlgmr.msra.gmra.mxu0 %vm139_vm3, %v716_v11 }
 0x64c   :  { %v789_v13 = vpop.f32.mrf.mxu0 }
 0x64d   :  { %v799_v14 = vadd.f32 %v797_v12, %v789_v13 }
 0x64e   :  { %v963_v15 = vpop.f32.mrf.mxu0 }
 0x64f   :  { %v800_v16 = vmul.f32 0.5, %v799_v14 }
 0x651   :  { %974 = vtanh.f32 %v800_v16 }
 0x65e   :  { %v975_v17 = vpop.eup %974 }
 0x65f   :  { %v802_v18 = vadd.f32 1.0, %v975_v17 }
 0x661   :  { %v803_v19 = vmul.f32 0.5, %v802_v18 }
 0x663   :  { %805 = vst.msk [vmem:[#allocation5] sm:$0x1] %vm804_vm5, %v803_v19 }
 0x664   :  { %1007 = shalt.err (!%p1004_p9)
}
 0x665   :  { %815 = dma.vmem_to_hbm [thread:$0]  %s813_s27, 16, %s1209_s8, [#allocation4]  }
 0x666   :  { %1018 = dma.done.wait [#allocation4], 16  }
 0x667   :  { %1019 = vsyncadd [#allocation4], 4294967280 }
 0x668   :  { %819 = vsyncpa [#allocation3], 1 }
 0x669   :  { %820 = vsyncpa [#allocation4], 1 }

// kernel: tpu_custom_call.1
= control target key start
LH: loop header
LB: loop body
LE: loop exit
PB: predicated region body
PF: predicated region fallthrough
CT: control target
= control target key end

     0   :  { %13 = vsyncpa [#allocation3], 0  ;;  %s1201_s0 = inlined_call_operand.vmem [shape: f32[8,6], index: 0, kind: input, shape index: {}]   ;;  %s1202_s1 = inlined_call_operand.vmem [shape: f32[8,16], index: 1, kind: input, shape index: {}]   ;;  %s1203_s2 = inlined_call_operand.vmem [shape: f32[6,32], index: 2, kind: input, shape index: {}]   ;;  %s1204_s3 = inlined_call_operand.hbm [shape: f32[4,32,32], index: 3, kind: input, shape index: {}]   ;;  %s1205_s4 = inlined_call_operand.vmem [shape: f32[2,32,16], index: 4, kind: input, shape index: {}]   ;;  %s1206_s5 = inlined_call_operand.vmem [shape: f32[16,32], index: 5, kind: input, shape index: {}]   ;;  %s1207_s6 = inlined_call_operand.vmem [shape: f32[8,32], index: 6, kind: input, shape index: {}]   ;;  %s1208_s7 = inlined_call_operand.vmem [shape: f32[9,32], index: 7, kind: input, shape index: {}]   ;;  %s1209_s8 = inlined_call_operand.hbm [shape: f32[1,1,8], index: 8, kind: output, shape index: {}]  }
   0x1   :  { %14 = vsyncpa [#allocation4], 0  ;;  %s1020_s27 = smov [#allocation2]  }
   0x2   :  { %s26_s28 = sshll.u32 %s1020_s27, 4  ;;  %s27_s28 = int_to_ptr.vmem [resolvable:$true] %s26_s28 }
   0x3   :  { %s984_s29 = scalar_lea.vmem %s27_s28, 2048  ;;  %p989_p1 = scmp.lt.s32.totalorder %s27_s28, %s27_s28 }
   0x4   :  { %p985_p0 = scmp.ne.s32.totalorder %s27_s28, %s984_s29  ;;  %p990_p2 = scmp.lt.s32.totalorder %s984_s29, %s984_s29 }
   0x6   :  { %p991_p3 = por %p990_p2, %p989_p1 }
   0x8   :  { %p992_p4 = pnand %p991_p3, %p985_p0 }
   0xa   :  { %995 = shalt.err (!%p992_p4)
}
   0xb   :  { %s1021_s30 = smov 128   ;;  %s1022_s9 = smov 8  }
   0xc   :  { %32 = dma.hbm_to_vmem [thread:$0]  %s1204_s3, 2048, %s27_s28, [#allocation3], %s1021_s30, %s1021_s30, %s1022_s9  }
   0xd   :  { %1016 = dma.done.wait [#allocation3], 2048  }
   0xe   :  { %1017 = vsyncadd [#allocation3], 4294965248  ;;  %v1023_v0 = vmov 0.0   ;;  %vm1024_vm0 = vmmov 0   ;;  %vm55_vm1 = vcmask 1045504   ;;  %vm51_vm2 = vcmask 48128  }
   0xf   :  { %881 = vmatprep.subr.mxu0 %v1023_v0  ;;  %883 = vmatprep.mubr.msk.f32.mxu0 %vm1024_vm0, %v1023_v0  ;;  %v45_v1 = vld [vmem:[%s1203_s2] sm:$0x3f]  ;;  %v133_v3 = vld [vmem:[#allocation2 + $0x18] sm:$0xff]  ;;  %v132_v4 = vld [vmem:[#allocation2 + $0x10] sm:$0xff]  ;;  %vm139_vm3 = vcmask 261120   ;;  %vm473_vm4 = vcmask 130048  }
  0x10   :  { %886 = vmatprep.subr.mxu1 %v1023_v0  ;;  %894 = vmatprep.mubr.msk.f32.mxu1 %vm1024_vm0, %v1023_v0  ;;  %v44_v2 = vld [vmem:[%s1201_s0] sm:$0xff]  ;;  %v131_v5 = vld [vmem:[#allocation2 + $0x8] sm:$0xff]  ;;  %v218_v7 = vld [vmem:[#allocation2 + $0x38] sm:$0xff]  ;;  %vm804_vm5 = vcmask 57344  }
  0x11   :  { %882 = vmatpush3.msk.msra.mxu0 %vm55_vm1, %v45_v1  ;;  %887 = vmatpush3.msra.mxu1 %v133_v3  ;;  %v130_v6 = vld [vmem:[#allocation2] sm:$0xff]  ;;  %v217_v13 = vld [vmem:[#allocation2 + $0x30] sm:$0xff]  ;;  %v216_v14 = vld [vmem:[#allocation2 + $0x28] sm:$0xff] }
  0x12   :  { %884 = vmatmul.mubr.msk.f32.vlgmr.msra.gmra.mxu0 %vm51_vm2, %v44_v2  ;;  %888 = vmatprep.subr.mxu1 %v1023_v0  ;;  %v821_v8 = vld [vmem:[%s1208_s7] ss:$0 sm:$0xff]  ;;  %v301_v16 = vld [vmem:[%s1205_s4 + $0x18] sm:$0xff]  ;;  %v824_v17 = vld [vmem:[%s1208_s7 + $0x1] ss:$0 sm:$0xff] }
  0x13   :  { %897 = vmatprep.subr.mxu0 %v1023_v0  ;;  %905 = vmatprep.mubr.msk.f32.mxu0 %vm1024_vm0, %v1023_v0  ;;  %v215_v15 = vld [vmem:[#allocation2 + $0x20] sm:$0xff]  ;;  %v833_v22 = vld [vmem:[%s1205_s4 + $0x38] sm:$0xff]  ;;  %v300_v23 = vld [vmem:[%s1205_s4 + $0x10] sm:$0xff] }
  0x14   :  { %889 = vmatpush3.msra.mxu1 %v132_v4  ;;  %898 = vmatpush3.msra.mxu0 %v218_v7  ;;  %v832_v24 = vld [vmem:[%s1205_s4 + $0x30] sm:$0xff]  ;;  %v299_v25 = vld [vmem:[%s1205_s4 + $0x8] sm:$0xff]  ;;  %v298_v27 = vld [vmem:[%s1205_s4] sm:$0xff] }
  0x15   :  { %890 = vmatprep.subr.mxu1 %v1023_v0  ;;  %899 = vmatprep.subr.mxu0 %v1023_v0  ;;  %v831_v26 = vld [vmem:[%s1205_s4 + $0x28] sm:$0xff]  ;;  %v830_v28 = vld [vmem:[%s1205_s4 + $0x20] sm:$0xff]  ;;  %v552_v36 = vld [vmem:[#allocation2 + $0x58] sm:$0xff] }
  0x16   :  { %891 = vmatpush3.msra.mxu1 %v131_v5  ;;  %900 = vmatpush3.msra.mxu0 %v217_v13  ;;  %v826_v29 = vld [vmem:[%s1208_s7 + $0x2] ss:$0 sm:$0xff]  ;;  %v467_v34 = vld [vmem:[%s1206_s5 + $0x8] sm:$0xff]  ;;  %v834_v37 = vld [vmem:[%s1208_s7 + $0x4] ss:$0 sm:$0xff] }
  0x17   :  { %892 = vmatprep.subr.mxu1 %v1023_v0  ;;  %901 = vmatprep.subr.mxu0 %v1023_v0  ;;  %v466_v35 = vld [vmem:[%s1206_s5] sm:$0xff]  ;;  %v551_v51 = vld [vmem:[#allocation2 + $0x50] sm:$0xff]  ;;  %v550_v52 = vld [vmem:[#allocation2 + $0x48] sm:$0xff] }
  0x18   :  { %893 = vmatpush3.msra.mxu1 %v130_v6  ;;  %902 = vmatpush3.msra.mxu0 %v216_v14  ;;  %v828_v45 = vld [vmem:[%s1208_s7 + $0x3] ss:$0 sm:$0xff]  ;;  %v636_v54 = vld [vmem:[#allocation2 + $0x78] sm:$0xff]  ;;  %v836_v55 = vld [vmem:[%s1208_s7 + $0x5] ss:$0 sm:$0xff]  ;;  %v1025_v6 = vmov 0  }
  0x19   :  { %908 = vmatprep.subr.mxu1 %v1023_v0  ;;  %903 = vmatprep.subr.mxu0 %v1023_v0  ;;  %v460_v46 = vld [vmem:[%s1202_s1] sm:$0xff]  ;;  %v635_v60 = vld [vmem:[#allocation2 + $0x70] sm:$0xff]  ;;  %v634_v61 = vld [vmem:[#allocation2 + $0x68] sm:$0xff] }
  0x1a   :  { %904 = vmatpush3.msra.mxu0 %v215_v15  ;;  %v549_v53 = vld [vmem:[#allocation2 + $0x40] sm:$0xff]  ;;  %v793_v5 = vld [vmem:[%s1208_s7 + $0x8] sm:$0x1]  ;;  %971 = vset.pattern.permute.xlu0 %v1025_v6 }
  0x1b   :  { %919 = vmatprep.subr.mxu0 %v1023_v0  ;;  %v633_v62 = vld [vmem:[#allocation2 + $0x60] sm:$0xff]  ;;  %796 = vperm.xlu0 %971, %v793_v5  }
  0x1c   :  { %v838_v63 = vld [vmem:[%s1208_s7 + $0x6] ss:$0 sm:$0xff] }
  0xd2   :  { %v125_v9 = vpop.f32.mrf.mxu0 }
  0xd3   :  { %v126_v10 = vadd.f32 %v821_v8, %v125_v9 }
  0xd4   :  { %v885_v11 = vpop.f32.mrf.mxu0 }
  0xd5   :  { %v129_v12 = vmax.f32 %v126_v10, 0.0  ;;  %v716_v11 = vld [vmem:[%s1207_s6] sm:$0xff] }
  0xd7   :  { %895 = vmatmul.mubr.msk.f32.vlgmr.msra.gmra.mxu1 %vm139_vm3, %v129_v12  ;;  %v797_v12 = vpop.permute.xlu0 %796 }
  0xd8   :  { %916 = vmatprep.mubr.msk.f32.mxu1 %vm1024_vm0, %v1023_v0  ;;  %909 = vmatpush3.msra.mxu1 %v301_v16 }
  0xd9   :  { %910 = vmatprep.subr.mxu1 %v1023_v0 }
  0xda   :  { %911 = vmatpush3.msra.mxu1 %v300_v23 }
  0xdb   :  { %912 = vmatprep.subr.mxu1 %v1023_v0 }
  0xdc   :  { %913 = vmatpush3.msra.mxu1 %v299_v25 }
  0xdd   :  { %914 = vmatprep.subr.mxu1 %v1023_v0 }
  0xde   :  { %915 = vmatpush3.msra.mxu1 %v298_v27 }
  0xdf   :  { %930 = vmatprep.subr.mxu1 %v1023_v0 }
 0x197   :  { %v209_v18 = vpop.f32.mrf.mxu1 }
 0x198   :  { %v210_v19 = vadd.f32 %v824_v17, %v209_v18 }
 0x199   :  { %v896_v20 = vpop.f32.mrf.mxu1 }
 0x19a   :  { %v213_v21 = vmax.f32 %v210_v19, 0.0 }
 0x19c   :  { %906 = vmatmul.mubr.msk.f32.vlgmr.msra.gmra.mxu0 %vm139_vm3, %v213_v21 }
 0x19d   :  { %920 = vmatpush3.msra.mxu0 %v833_v22  ;;  %927 = vmatprep.mubr.msk.f32.mxu0 %vm1024_vm0, %v1023_v0 }
 0x19e   :  { %921 = vmatprep.subr.mxu0 %v1023_v0 }
 0x19f   :  { %922 = vmatpush3.msra.mxu0 %v832_v24 }
 0x1a0   :  { %923 = vmatprep.subr.mxu0 %v1023_v0 }
 0x1a1   :  { %924 = vmatpush3.msra.mxu0 %v831_v26 }
 0x1a2   :  { %925 = vmatprep.subr.mxu0 %v1023_v0 }
 0x1a3   :  { %926 = vmatpush3.msra.mxu0 %v830_v28 }
 0x1a4   :  { %937 = vmatprep.subr.mxu0 %v1023_v0 }
 0x25c   :  { %v293_v30 = vpop.f32.mrf.mxu0 }
 0x25d   :  { %v294_v31 = vadd.f32 %v826_v29, %v293_v30 }
 0x25e   :  { %v907_v32 = vpop.f32.mrf.mxu0 }
 0x25f   :  { %v297_v33 = vmax.f32 %v294_v31, 0.0 }
 0x261   :  { %917 = vmatmul.mubr.msk.f32.vlgmr.msra.gmra.mxu1 %vm139_vm3, %v297_v33  ;;  %928 = vmatmul.mubr.msk.f32.vlgmr.msra.gmra.mxu0 %vm139_vm3, %v297_v33 }
 0x262   :  { %934 = vmatprep.mubr.msk.f32.mxu1 %vm1024_vm0, %v1023_v0  ;;  %945 = vmatprep.mubr.msk.f32.mxu0 %vm1024_vm0, %v1023_v0 }
 0x263   :  { %931 = vmatpush3.msra.mxu1 %v467_v34  ;;  %938 = vmatpush3.msra.mxu0 %v552_v36 }
 0x264   :  { %932 = vmatprep.subr.mxu1 %v1023_v0  ;;  %939 = vmatprep.subr.mxu0 %v1023_v0 }
 0x265   :  { %933 = vmatpush3.msra.mxu1 %v466_v35  ;;  %940 = vmatpush3.msra.mxu0 %v551_v51 }
 0x266   :  { %948 = vmatprep.subr.mxu1 %v1023_v0  ;;  %941 = vmatprep.subr.mxu0 %v1023_v0 }
 0x267   :  { %942 = vmatpush3.msra.mxu0 %v550_v52 }
 0x268   :  { %943 = vmatprep.subr.mxu0 %v1023_v0 }
 0x269   :  { %944 = vmatpush3.msra.mxu0 %v549_v53 }
 0x26a   :  { %959 = vmatprep.subr.mxu0 %v1023_v0 }
 0x321   :  { %v376_v38 = vpop.f32.mrf.mxu1  ;;  %v456_v39 = vpop.f32.mrf.mxu0 }
 0x322   :  { %v457_v40 = vadd.f32 %v834_v37, %v456_v39  ;;  %v377_v48 = vadd.f32 %v828_v45, %v376_v38 }
 0x323   :  { %v918_v41 = vpop.f32.mrf.mxu1  ;;  %v929_v42 = vpop.f32.mrf.mxu0 }
 0x324   :  { %v461_v43 = vmul.f32 0.5, %v457_v40 }
 0x326   :  { %v462_v44 = vmul.f32 1.442695, %v461_v43 }
 0x328   :  { %972 = vpow2.f32 %v462_v44 }
 0x335   :  { %v973_v47 = vpop.eup %972 }
 0x336   :  { %v464_v49 = vmul.f32 %v973_v47, %v460_v46 }
 0x338   :  { %v465_v50 = vadd.f32 %v464_v49, %v377_v48 }
 0x33a   :  { %935 = vmatmul.mubr.msk.f32.vlgmr.msra.gmra.mxu1 %vm473_vm4, %v465_v50 }
 0x33b   :  { %956 = vmatprep.mubr.msk.f32.mxu1 %vm1024_vm0, %v1023_v0  ;;  %949 = vmatpush3.msra.mxu1 %v636_v54 }
 0x33c   :  { %950 = vmatprep.subr.mxu1 %v1023_v0 }
 0x33d   :  { %951 = vmatpush3.msra.mxu1 %v635_v60 }
 0x33e   :  { %952 = vmatprep.subr.mxu1 %v1023_v0 }
 0x33f   :  { %953 = vmatpush3.msra.mxu1 %v634_v61 }
 0x340   :  { %954 = vmatprep.subr.mxu1 %v1023_v0 }
 0x341   :  { %955 = vmatpush3.msra.mxu1 %v633_v62 }
 0x3fa   :  { %v543_v56 = vpop.f32.mrf.mxu1 }
 0x3fb   :  { %v544_v57 = vadd.f32 %v836_v55, %v543_v56 }
 0x3fc   :  { %v936_v58 = vpop.f32.mrf.mxu1 }
 0x3fd   :  { %v547_v59 = vmax.f32 %v544_v57, 0.0 }
 0x3ff   :  { %946 = vmatmul.mubr.msk.f32.vlgmr.msra.gmra.mxu0 %vm139_vm3, %v547_v59 }
 0x400   :  { %961 = vmatprep.mubr.msk.f32.mxu0 %vm1024_vm0, %v1023_v0  ;;  %v840_v0 = vld [vmem:[%s1208_s7 + $0x7] ss:$0 sm:$0xff]  ;;  %s1026_s7 = smov [#allocation5]  }
 0x401   :  { %s812_s27 = sshll.u32 %s1026_s7, 4  ;;  %s813_s27 = int_to_ptr.vmem [resolvable:$true] %s812_s27 }
 0x402   :  { %s996_s28 = scalar_lea.vmem %s813_s27, 16  ;;  %s1000_s29 = scalar_lea.vmem %s813_s27, 32 }
 0x403   :  { %p997_p5 = scmp.ne.s32.totalorder %s813_s27, %s996_s28  ;;  %p1001_p6 = scmp.lt.s32.totalorder %s813_s27, %s813_s27 }
 0x404   :  { %p1002_p7 = scmp.lt.s32.totalorder %s1000_s29, %s996_s28 }
 0x406   :  { %p1003_p8 = por %p1002_p7, %p1001_p6 }
 0x408   :  { %p1004_p9 = pnand %p1003_p8, %p997_p5 }
 0x4bf   :  { %v627_v1 = vpop.f32.mrf.mxu0 }
 0x4c0   :  { %v628_v2 = vadd.f32 %v838_v63, %v627_v1 }
 0x4c1   :  { %v947_v3 = vpop.f32.mrf.mxu0 }
 0x4c2   :  { %v631_v4 = vmax.f32 %v628_v2, 0.0 }
 0x4c4   :  { %957 = vmatmul.mubr.msk.f32.vlgmr.msra.gmra.mxu1 %vm139_vm3, %v631_v4 }
 0x584   :  { %v711_v7 = vpop.f32.mrf.mxu1 }
 0x585   :  { %v712_v8 = vadd.f32 %v840_v0, %v711_v7 }
 0x586   :  { %v958_v9 = vpop.f32.mrf.mxu1 }
 0x587   :  { %v715_v10 = vmax.f32 %v712_v8, 0.0 }
 0x589   :  { %960 = vmatpush3.xpose.msk.msra.mxu0 %vm139_vm3, %v715_v10 }
 0x58c   :  { %962 = vmatmul.mubr.msk.f32.vlgmr.msra.gmra.mxu0 %vm139_vm3, %v716_v11 }
 0x64c   :  { %v789_v13 = vpop.f32.mrf.mxu0 }
 0x64d   :  { %v799_v14 = vadd.f32 %v797_v12, %v789_v13 }
 0x64e   :  { %v963_v15 = vpop.f32.mrf.mxu0 }
 0x64f   :  { %v800_v16 = vmul.f32 0.5, %v799_v14 }
 0x651   :  { %974 = vtanh.f32 %v800_v16 }
 0x65e   :  { %v975_v17 = vpop.eup %974 }
 0x65f   :  { %v802_v18 = vadd.f32 1.0, %v975_v17 }
 0x661   :  { %v803_v19 = vmul.f32 0.5, %v802_v18 }
 0x663   :  { %805 = vst.msk [vmem:[#allocation5] sm:$0x1] %vm804_vm5, %v803_v19 }
 0x664   :  { %1007 = shalt.err (!%p1004_p9)
}
 0x665   :  { %815 = dma.vmem_to_hbm [thread:$0]  %s813_s27, 16, %s1209_s8, [#allocation4]  }
 0x666   :  { %1018 = dma.done.wait [#allocation4], 16  }
 0x667   :  { %1019 = vsyncadd [#allocation4], 4294967280 }
 0x668   :  { %819 = vsyncpa [#allocation3], 1 }
 0x669   :  { %820 = vsyncpa [#allocation4], 1 }

</bundles_post_ra>
